<compile_context>
chip_gen: v6e
topology: v6e:2x2x1
jax: 0.10.0
libtpu: 0.0.40
codegen_flags: <defaults>
</compile_context>

<pallas_src>
import jax
import jax.numpy as jnp
from jax.experimental import pallas as pl
from jax.experimental.pallas import tpu as pltpu


def _make_hbm_copy_kernel(bounds):
    """Kernel factory closing over static chunk boundaries along axis 0."""

    def kernel(x_hbm, o_hbm, sems):
        copies = []
        # Start every chunk's DMA first so the copies overlap, then wait.
        for i, (lo, hi) in enumerate(zip(bounds[:-1], bounds[1:])):
            cp = pltpu.make_async_copy(
                x_hbm.at[lo:hi], o_hbm.at[lo:hi], sems.at[i]
            )
            cp.start()
            copies.append(cp)
        for cp in copies:
            cp.wait()

    return kernel


def straight_through(x: jax.Array) -> jax.Array:
    """Pallas equivalent of StraightThrough.forward: identity (materialized copy).

    As a pure identity, the cheapest path for callers holding a donatable
    operand is to not copy at all; this kernel covers the case where an
    explicit output buffer is required.
    """
    if x.size == 0:
        return x  # nothing to copy

    orig_shape = x.shape
    x_view = x.reshape((1,)) if x.ndim == 0 else x
    leading = x_view.shape[0]
    nbytes = int(x_view.size) * jnp.dtype(x_view.dtype).itemsize

    # A handful of concurrent DMAs for large tensors; a single DMA otherwise.
    if leading > 1 and nbytes >= (8 << 20):
        n_chunks = min(4, leading)
    else:
        n_chunks = 1
    base, rem = divmod(leading, n_chunks)
    bounds = [0]
    for i in range(n_chunks):
        bounds.append(bounds[-1] + base + (1 if i < rem else 0))

    out = pl.pallas_call(
        _make_hbm_copy_kernel(tuple(bounds)),
        out_shape=jax.ShapeDtypeStruct(x_view.shape, x_view.dtype),
        in_specs=[pl.BlockSpec(memory_space=pl.ANY)],
        out_specs=pl.BlockSpec(memory_space=pl.ANY),
        scratch_shapes=[pltpu.SemaphoreType.DMA((n_chunks,))],
        cost_estimate=pl.CostEstimate(
            flops=0, transcendentals=0, bytes_accessed=2 * nbytes
        ),
    )(x_view)

    return out.reshape(orig_shape)


if __name__ == "__main__":
    key = jax.random.PRNGKey(0)

    # Small NCHW-shaped input consistent with a conv-style quantizer module.
    x = jax.random.normal(key, (2, 4, 16, 16), dtype=jnp.float32)
    y = jax.block_until_ready(straight_through(x))
    assert y.shape == x.shape and y.dtype == x.dtype
    assert bool(jnp.array_equal(y, x))

    # Non-128-divisible / odd shape: the DMA path has no tiling constraints.
    x_odd = jax.random.normal(jax.random.PRNGKey(0), (3, 5, 7), dtype=jnp.float32)
    y_odd = jax.block_until_ready(straight_through(x_odd))
    assert y_odd.shape == x_odd.shape
    assert bool(jnp.array_equal(y_odd, x_odd))

    # bf16 path exercising the same single-launch DMA copy.
    x_bf16 = jax.random.normal(jax.random.PRNGKey(1), (8, 32), dtype=jnp.bfloat16)
    y_bf16 = jax.block_until_ready(straight_through(x_bf16))
    assert bool(jnp.array_equal(y_bf16, x_bf16))

    print("KERNEL_OK")
</pallas_src>

<mosaic_0001>
module attributes {stable_mosaic.version = 11 : i64} {
  func.func @kernel(%arg0: memref<2x4x16x16xf32, #tpu.memory_space<any>>, %arg1: memref<2x4x16x16xf32, #tpu.memory_space<any>>, %arg2: memref<1x!tpu.dma_semaphore, #tpu.memory_space<semaphore_mem>>) attributes {dimension_semantics = [], scalar_prefetch = 0 : i64, scratch_operands = 1 : i64, tpu.core_type = #tpu.core_type<tc>} {
    %c0_i32 = arith.constant 0 : i32
    %c0_i32_0 = arith.constant 0 : i32
    %c0_i32_1 = arith.constant 0 : i32
    %c0_i32_2 = arith.constant 0 : i32
    %c0_i32_3 = arith.constant 0 : i32
    %0 = tpu.memref_slice %arg0[%c0_i32_0, %c0_i32_1, %c0_i32_2, %c0_i32_3] : memref<2x4x16x16xf32, #tpu.memory_space<any>> -> memref<2x4x16x16xf32, #tpu.memory_space<any>>
    %c0_i32_4 = arith.constant 0 : i32
    %c0_i32_5 = arith.constant 0 : i32
    %c0_i32_6 = arith.constant 0 : i32
    %c0_i32_7 = arith.constant 0 : i32
    %1 = tpu.memref_slice %arg1[%c0_i32_4, %c0_i32_5, %c0_i32_6, %c0_i32_7] : memref<2x4x16x16xf32, #tpu.memory_space<any>> -> memref<2x4x16x16xf32, #tpu.memory_space<any>>
    %2 = tpu.memref_slice %arg2[%c0_i32] : memref<1x!tpu.dma_semaphore, #tpu.memory_space<semaphore_mem>> -> memref<1x!tpu.dma_semaphore, #tpu.memory_space<semaphore_mem>>
    %3 = tpu.memref_squeeze %2 : memref<1x!tpu.dma_semaphore, #tpu.memory_space<semaphore_mem>> -> memref<!tpu.dma_semaphore, #tpu.memory_space<semaphore_mem>>
    tpu.enqueue_dma source(%0 : memref<2x4x16x16xf32, #tpu.memory_space<any>>) target(%1 : memref<2x4x16x16xf32, #tpu.memory_space<any>>) target_semaphore(%3 : memref<!tpu.dma_semaphore, #tpu.memory_space<semaphore_mem>>)
    %c0_i32_8 = arith.constant 0 : i32
    %c0_i32_9 = arith.constant 0 : i32
    %c0_i32_10 = arith.constant 0 : i32
    %c0_i32_11 = arith.constant 0 : i32
    %c0_i32_12 = arith.constant 0 : i32
    %4 = tpu.memref_slice %arg0[%c0_i32_9, %c0_i32_10, %c0_i32_11, %c0_i32_12] : memref<2x4x16x16xf32, #tpu.memory_space<any>> -> memref<2x4x16x16xf32, #tpu.memory_space<any>>
    %c0_i32_13 = arith.constant 0 : i32
    %c0_i32_14 = arith.constant 0 : i32
    %c0_i32_15 = arith.constant 0 : i32
    %c0_i32_16 = arith.constant 0 : i32
    %5 = tpu.memref_slice %arg1[%c0_i32_13, %c0_i32_14, %c0_i32_15, %c0_i32_16] : memref<2x4x16x16xf32, #tpu.memory_space<any>> -> memref<2x4x16x16xf32, #tpu.memory_space<any>>
    %6 = tpu.memref_slice %arg2[%c0_i32_8] : memref<1x!tpu.dma_semaphore, #tpu.memory_space<semaphore_mem>> -> memref<1x!tpu.dma_semaphore, #tpu.memory_space<semaphore_mem>>
    %7 = tpu.memref_squeeze %6 : memref<1x!tpu.dma_semaphore, #tpu.memory_space<semaphore_mem>> -> memref<!tpu.dma_semaphore, #tpu.memory_space<semaphore_mem>>
    tpu.wait_dma2 semaphore(%7 : memref<!tpu.dma_semaphore, #tpu.memory_space<semaphore_mem>>) src(%4 : memref<2x4x16x16xf32, #tpu.memory_space<any>>) dst(%5 : memref<2x4x16x16xf32, #tpu.memory_space<any>>)
    return
  }
}

</mosaic_0001>

<bundles_post_ra>
// kernel: tpu_custom_call.1
= control target key start
LH: loop header
LB: loop body
LE: loop exit
PB: predicated region body
PF: predicated region fallthrough
CT: control target
= control target key end

     0   :  { %s30_s6 = smov [#allocation2]   ;;  %s31_s7 = smov 131072   ;;  %s49_s0 = inlined_call_operand.hbm [shape: f32[2,4,16,16], index: 0, kind: input, shape index: {}]   ;;  %s50_s1 = inlined_call_operand.hbm [shape: f32[2,4,16,16], index: 1, kind: output, shape index: {}]  }
   0x1   :  { %s32_s8 = smov 0  }
   0x2   :  { %12 = dma.general %s49_s0, 2048, %s50_s1, %s30_s6, %s31_s7, [#allocation4], %s32_s8, 0  }
   0x3   :  { %28 = dma.done.wait [#allocation2], 2048 }
   0x4   :  { %29 = vsyncadd [#allocation2], 4294965248 }
   0x5   :  { %18 = vsyncmov [#allocation2] }
   0x8   :  { %s19_s13 = vpop.sfrf %18 }
   0x9   :  { %p24_p0 = scmp.ne.s32.totalorder %s19_s13, 0 }
   0xb   :  { %23 = shalt.err (%p24_p0)  }

</bundles_post_ra>
